<compile_context>
chip_gen: v7x
topology: tpu7x:2x2x1
jax: 0.10.0
libtpu: 0.0.40
codegen_flags: <defaults>
</compile_context>

<pallas_src>
import functools
import math

import jax
import jax.numpy as jnp
from jax.experimental import pallas as pl
from jax.experimental.pallas import tpu as pltpu


@functools.lru_cache(maxsize=None)
def _vmem_limit():
    """Generation-aware scoped-VMEM limit (bytes)."""
    cap = None
    try:
        cap = getattr(pltpu.get_tpu_info(), "vmem_capacity_bytes", None)
    except Exception:
        cap = None
    if not cap:
        return 40 * 1024 * 1024            # safe everywhere (v7x has 64 MiB physical)
    if cap >= 100 * 1024 * 1024:
        return 96 * 1024 * 1024            # v5e / v6e: 128 MiB physical
    return 44 * 1024 * 1024                # v7x: 64 MiB physical


def _bf16(a):
    return a if a.dtype == jnp.bfloat16 else a.astype(jnp.bfloat16)


def _fit(dim, target):
    """Largest tile <= target dividing dim; never exceeds target when dim > target."""
    if dim <= target:
        return dim
    for t in range(target, 0, -1):
        if dim % t == 0:
            return t
    return dim


# ----------------------------------------------------------------------------
# Tiled dense: y = activation(x @ w + b)
# ----------------------------------------------------------------------------
def _dense_kernel(x_ref, w_ref, b_ref, o_ref, acc_ref, *, activation):
    @pl.when(pl.program_id(2) == 0)
    def _init():
        acc_ref[...] = jnp.zeros_like(acc_ref)

    acc_ref[...] += jnp.dot(x_ref[...], w_ref[...],
                            preferred_element_type=jnp.float32)

    @pl.when(pl.program_id(2) == pl.num_programs(2) - 1)
    def _finalize():
        y = acc_ref[...] + b_ref[...]
        if activation == "gelu":
            # TODO(synk): erf-form GELU for strict pytorch-pretrained-bert parity;
            # tanh approximation used here (EUP-friendly), diff ~1e-3.
            y = 0.5 * y * (1.0 + jnp.tanh(0.7978845608028654 *
                                          (y + 0.044715 * y * y * y)))
        elif activation == "tanh":
            y = jnp.tanh(y)
        o_ref[...] = y.astype(o_ref.dtype)


def pallas_dense(x, w, b, activation=None, out_dtype=jnp.bfloat16,
                 bm=512, bn=512, bk=1024):
    """x:[M,K], w:[K,N] (bf16), b:[N] (f32) -> [M,N] in out_dtype."""
    M, K = x.shape
    _, N = w.shape
    tm, tn, tk = _fit(M, bm), _fit(N, bn), _fit(K, bk)
    grid = (M // tm, N // tn, K // tk)
    return pl.pallas_call(
        functools.partial(_dense_kernel, activation=activation),
        out_shape=jax.ShapeDtypeStruct((M, N), out_dtype),
        grid=grid,
        in_specs=[
            pl.BlockSpec((tm, tk), lambda i, j, k: (i, k)),
            pl.BlockSpec((tk, tn), lambda i, j, k: (k, j)),
            pl.BlockSpec((1, tn), lambda i, j, k: (0, j)),
        ],
        out_specs=pl.BlockSpec((tm, tn), lambda i, j, k: (i, j)),
        scratch_shapes=[pltpu.VMEM((tm, tn), jnp.float32)],
        compiler_params=pltpu.CompilerParams(
            dimension_semantics=("parallel", "parallel", "arbitrary"),
            vmem_limit_bytes=_vmem_limit()),
    )(_bf16(x), _bf16(w), b.reshape(1, N).astype(jnp.float32))


# ----------------------------------------------------------------------------
# Dense with fused residual-add + LayerNorm epilogue:
#   y = LayerNorm((x @ w + b) + residual) * gamma + beta
# N (=hidden) is kept as a single output tile so the LN row statistics are
# complete inside the finalize step — no extra HBM round trip for the LN.
# ----------------------------------------------------------------------------
def _dense_add_ln_kernel(x_ref, w_ref, b_ref, r_ref, g_ref, bt_ref,
                         o_ref, acc_ref, *, eps):
    @pl.when(pl.program_id(1) == 0)
    def _init():
        acc_ref[...] = jnp.zeros_like(acc_ref)

    acc_ref[...] += jnp.dot(x_ref[...], w_ref[...],
                            preferred_element_type=jnp.float32)

    @pl.when(pl.program_id(1) == pl.num_programs(1) - 1)
    def _finalize():
        y = acc_ref[...] + b_ref[...] + r_ref[...].astype(jnp.float32)
        mu = jnp.mean(y, axis=-1, keepdims=True)
        yc = y - mu
        var = jnp.mean(yc * yc, axis=-1, keepdims=True)
        o_ref[...] = (yc * jax.lax.rsqrt(var + eps) * g_ref[...]
                      + bt_ref[...]).astype(o_ref.dtype)


def pallas_dense_add_ln(x, w, b, residual, gamma, beta, eps=1e-12,
                        out_dtype=jnp.bfloat16, bm=512, bk=1024):
    M, K = x.shape
    _, N = w.shape
    assert N <= 4096, "LN-fused dense keeps the full hidden dim in one tile"
    tm, tk = _fit(M, bm), _fit(K, bk)
    grid = (M // tm, K // tk)
    return pl.pallas_call(
        functools.partial(_dense_add_ln_kernel, eps=eps),
        out_shape=jax.ShapeDtypeStruct((M, N), out_dtype),
        grid=grid,
        in_specs=[
            pl.BlockSpec((tm, tk), lambda i, k: (i, k)),
            pl.BlockSpec((tk, N), lambda i, k: (k, 0)),
            pl.BlockSpec((1, N), lambda i, k: (0, 0)),
            pl.BlockSpec((tm, N), lambda i, k: (i, 0)),
            pl.BlockSpec((1, N), lambda i, k: (0, 0)),
            pl.BlockSpec((1, N), lambda i, k: (0, 0)),
        ],
        out_specs=pl.BlockSpec((tm, N), lambda i, k: (i, 0)),
        scratch_shapes=[pltpu.VMEM((tm, N), jnp.float32)],
        compiler_params=pltpu.CompilerParams(
            dimension_semantics=("parallel", "arbitrary"),
            vmem_limit_bytes=_vmem_limit()),
    )(_bf16(x), _bf16(w), b.reshape(1, N).astype(jnp.float32),
      _bf16(residual), gamma.reshape(1, N).astype(jnp.float32),
      beta.reshape(1, N).astype(jnp.float32))


# ----------------------------------------------------------------------------
# Standalone LayerNorm (embedding LN), large row tiles, f32 math, bf16 I/O
# ----------------------------------------------------------------------------
def _ln_kernel(x_ref, g_ref, b_ref, o_ref, *, eps):
    x = x_ref[...].astype(jnp.float32)
    mu = jnp.mean(x, axis=-1, keepdims=True)
    xc = x - mu
    var = jnp.mean(xc * xc, axis=-1, keepdims=True)
    o_ref[...] = (xc * jax.lax.rsqrt(var + eps) * g_ref[...]
                  + b_ref[...]).astype(o_ref.dtype)


def pallas_layernorm(x, gamma, beta, eps=1e-12, out_dtype=jnp.bfloat16, bm=1024):
    M, H = x.shape
    tm = _fit(M, bm)
    return pl.pallas_call(
        functools.partial(_ln_kernel, eps=eps),
        out_shape=jax.ShapeDtypeStruct((M, H), out_dtype),
        grid=(M // tm,),
        in_specs=[
            pl.BlockSpec((tm, H), lambda i: (i, 0)),
            pl.BlockSpec((1, H), lambda i: (0, 0)),
            pl.BlockSpec((1, H), lambda i: (0, 0)),
        ],
        out_specs=pl.BlockSpec((tm, H), lambda i: (i, 0)),
        compiler_params=pltpu.CompilerParams(
            dimension_semantics=("parallel",),
            vmem_limit_bytes=_vmem_limit()),
    )(x, gamma.reshape(1, H).astype(jnp.float32),
      beta.reshape(1, H).astype(jnp.float32))


# ----------------------------------------------------------------------------
# Multi-head self-attention, fed directly by the fused QKV activation.
#   grid = (B, S // tq); per step: one query tile, all heads (static loop),
#   full K/V panel stays VMEM-resident across the query tiles of a batch row.
#   Input layout [B, S, 3H] = [q heads | k heads | v heads] on lanes; output
#   is written directly in [B, S, H] — no XLA transposes on either side.
# ----------------------------------------------------------------------------
def _attention_kernel(q_ref, kv_ref, m_ref, o_ref, *, num_heads, head_dim, scale):
    H = num_heads * head_dim
    qblk = q_ref[0]                        # (tq, 3H) bf16 (only first H lanes used)
    kv = kv_ref[0]                         # (S, 3H) bf16
    mask = m_ref[0]                        # (1, S) f32 additive bias

    for h in range(num_heads):             # static unroll; one (tq, S) live tile/head
        lo = h * head_dim
        q = qblk[:, lo:lo + head_dim] * scale                      # bf16, scale folded in
        k = kv[:, H + lo:H + lo + head_dim]                        # (S, dh)
        v = kv[:, 2 * H + lo:2 * H + lo + head_dim]                # (S, dh)
        s = jax.lax.dot_general(q, k, (((1,), (1,)), ((), ())),
                                preferred_element_type=jnp.float32)  # (tq, S)
        s = s + mask
        s = s - jnp.max(s, axis=-1, keepdims=True)
        p = jnp.exp(s)
        p = p * pl.reciprocal(jnp.sum(p, axis=-1, keepdims=True), approx=True)
        ctx = jnp.dot(p.astype(jnp.bfloat16), v,
                      preferred_element_type=jnp.float32)            # (tq, dh)
        o_ref[0, :, lo:lo + head_dim] = ctx.astype(o_ref.dtype)


def pallas_attention(qkv, mask_bias, num_heads, scale, tq_target=256):
    """qkv: [B, S, 3H] bf16 (q|k|v lane-concatenated); mask_bias: [B, 1, S] f32.
       Returns context in [B, S, H] bf16 (heads already merged on lanes)."""
    B, S, threeH = qkv.shape
    H = threeH // 3
    head_dim = H // num_heads
    tq = _fit(S, tq_target)
    # TODO(synk): for very long sequences add a kv-block (flash-style) axis with
    # running max/sum scratch; full-S K/V per step is fine up to a few thousand.
    kern = functools.partial(_attention_kernel, num_heads=num_heads,
                             head_dim=head_dim, scale=scale)
    qkv = _bf16(qkv)
    return pl.pallas_call(
        kern,
        out_shape=jax.ShapeDtypeStruct((B, S, H), jnp.bfloat16),
        grid=(B, S // tq),
        in_specs=[
            pl.BlockSpec((1, tq, threeH), lambda b, qi: (b, qi, 0)),   # query rows
            pl.BlockSpec((1, S, threeH), lambda b, qi: (b, 0, 0)),     # K/V panel (resident)
            pl.BlockSpec((1, 1, S), lambda b, qi: (b, 0, 0)),          # additive mask
        ],
        out_specs=pl.BlockSpec((1, tq, H), lambda b, qi: (b, qi, 0)),
        compiler_params=pltpu.CompilerParams(
            dimension_semantics=("parallel", "parallel"),
            vmem_limit_bytes=_vmem_limit()),
    )(qkv, qkv, mask_bias.astype(jnp.float32))


# ----------------------------------------------------------------------------
# Fused (enc + pos) -> {Conv2d(k,H) -> max-pool} for all filter sizes at once.
# One lane-dense matmul (TB*S, H) @ (H, KSUM*F) per grid step, then shifted
# adds + per-width max-pool; TB batch rows per step give a sublane-dense 2-D
# output block (no masked single-row stores).
# ----------------------------------------------------------------------------
def _conv_pool_kernel(enc_ref, pos_ref, w_ref, b_ref, o_ref, *,
                      filter_sizes, n_filters):
    TB, S, H = enc_ref.shape
    F = n_filters
    x = (enc_ref[...].astype(jnp.float32)
         + pos_ref[...][None, :, :]).astype(jnp.bfloat16)             # (TB, S, H)
    y = jnp.dot(x.reshape(TB * S, H), w_ref[...],
                preferred_element_type=jnp.float32)                   # (TB*S, KSUM*F)
    y = y.reshape(TB, S, -1)
    feats = []
    off = 0
    for idx, ksz in enumerate(filter_sizes):
        t_out = S - ksz + 1
        acc = jnp.zeros((TB, t_out, F), jnp.float32)
        for r in range(ksz):                       # static shifted adds (VPU only)
            col = (off + r) * F
            acc = acc + y[:, r:r + t_out, col:col + F]
        off += ksz
        acc = acc + b_ref[idx:idx + 1, :]                             # (TB, t_out, F)
        feats.append(jnp.max(acc, axis=1))                            # (TB, F)
    o_ref[...] = jnp.concatenate(feats, axis=-1)                      # (TB, n_sizes*F)


def pallas_conv_pool(enc, pos, w_all, b_stacked, filter_sizes, n_filters):
    """enc:[B,S,H] bf16, pos:[S,H] f32, w_all:[H, sum(k)*F] bf16,
       b:[n_sizes,F] f32 -> [B, n_sizes*F] f32."""
    B, S, H = enc.shape
    KSUMF = w_all.shape[1]
    n_sizes = len(filter_sizes)
    TB = _fit(B, 8)
    return pl.pallas_call(
        functools.partial(_conv_pool_kernel, filter_sizes=tuple(filter_sizes),
                          n_filters=n_filters),
        out_shape=jax.ShapeDtypeStruct((B, n_sizes * n_filters), jnp.float32),
        grid=(B // TB,),
        in_specs=[
            pl.BlockSpec((TB, S, H), lambda i: (i, 0, 0)),
            pl.BlockSpec((S, H), lambda i: (0, 0)),
            pl.BlockSpec((H, KSUMF), lambda i: (0, 0)),
            pl.BlockSpec((n_sizes, n_filters), lambda i: (0, 0)),
        ],
        out_specs=pl.BlockSpec((TB, n_sizes * n_filters), lambda i: (i, 0)),
        compiler_params=pltpu.CompilerParams(
            dimension_semantics=("parallel",),
            vmem_limit_bytes=_vmem_limit()),
    )(_bf16(enc), pos.astype(jnp.float32), _bf16(w_all),
      b_stacked.astype(jnp.float32))


# ----------------------------------------------------------------------------
# Synthetic BERT encoder (fused QKV, transpose-free attention, LN fused into
# the dense epilogues).
# ----------------------------------------------------------------------------
def bert_forward(bp, token_ids, attn_mask, cfg):
    B, S = token_ids.shape
    H = cfg["hidden"]
    nh = cfg["heads"]
    dh = H // nh
    scale = 1.0 / math.sqrt(dh)

    # Embeddings (gathers are plain-JAX glue).
    we = bp["word_emb"][token_ids]                       # [B,S,H] f32
    pe = bp["bert_pos_emb"][jnp.arange(S)]               # [S,H]
    te = bp["type_emb"][0]                               # [H]
    emb = we + pe[None, :, :] + te[None, None, :]
    h = pallas_layernorm(emb.reshape(B * S, H), bp["emb_ln_g"], bp["emb_ln_b"])

    # Additive mask bias, per batch element only (not duplicated per head).
    mask_bias = ((1.0 - attn_mask.astype(jnp.float32)) * -10000.0).reshape(B, 1, S)

    for layer in bp["layers"]:
        x2 = h                                                        # [B*S,H] bf16
        # Fused QKV projection: one [H,3H] matmul; the reshape below is a view
        # (no HBM traffic), and attention consumes it directly — no transposes.
        qkv = pallas_dense(x2, layer["qkv_w"], layer["qkv_b"]).reshape(B, S, 3 * H)
        ctx = pallas_attention(qkv, mask_bias, nh, scale).reshape(B * S, H)
        # attention output projection + residual + LayerNorm, fused epilogue.
        h1 = pallas_dense_add_ln(ctx, layer["ao_w"], layer["ao_b"],
                                 residual=x2, gamma=layer["ln1_g"], beta=layer["ln1_b"])
        inter = pallas_dense(h1, layer["i_w"], layer["i_b"], activation="gelu")
        # FFN output projection + residual + LayerNorm, fused epilogue.
        h = pallas_dense_add_ln(inter, layer["o_w"], layer["o_b"],
                                residual=h1, gamma=layer["ln2_g"], beta=layer["ln2_b"])

    # pooler output is unused by Model.forward -> skipped (dead compute).
    return h.reshape(B, S, H)                                         # bf16


# ----------------------------------------------------------------------------
# Model forward (mirrors Model.forward)
# ----------------------------------------------------------------------------
def model_forward(params, x, cfg):
    context, _seq_len, mask = x           # x = (token_ids, seq_len, mask); x[1] unused
    B, S = context.shape

    encoder_out = bert_forward(params["bert"], context, mask, cfg)    # [B,S,H] bf16

    # self.position_embedding(arange(S)) broadcast over batch.
    rel_pos_emb = params["position_embedding"][:S]                    # [S,H] f32

    # TODO(synk): the literal torch code does encoder_out.unsqueeze(1) + [B,S,H]
    # which broadcasts to [B,B,S,H] and only feeds Conv2d(in_channels=1) when
    # B == 1; we implement the intended per-sample add -> [B,1,S,H].
    out = pallas_conv_pool(encoder_out, rel_pos_emb,
                           params["conv_w"], params["conv_b"],
                           cfg["filter_sizes"], cfg["num_filters"])   # [B, 3F] f32

    # dropout is identity in eval mode
    logits = pallas_dense(out, params["fc_w"], params["fc_b"], out_dtype=jnp.float32)
    return logits


# ----------------------------------------------------------------------------
# Deterministic parameter init (synthetic weights; matmul weights stored bf16)
# ----------------------------------------------------------------------------
def init_params(key, cfg):
    H, V, I = cfg["hidden"], cfg["vocab"], cfg["intermediate"]
    F, P, C = cfg["num_filters"], cfg["pad_size"], cfg["num_classes"]
    keys = iter(jax.random.split(key, 256))
    bf = jnp.bfloat16

    def nrm(shape, dtype=jnp.float32):
        return (0.02 * jax.random.normal(next(keys), shape, jnp.float32)).astype(dtype)

    def zeros(shape):
        return jnp.zeros(shape, jnp.float32)

    def ones(shape):
        return jnp.ones(shape, jnp.float32)

    layers = []
    for _ in range(cfg["layers"]):
        layers.append(dict(
            # qkv_w == concat([Wq, Wk, Wv], axis=1) of the torch per-projection weights
            qkv_w=nrm((H, 3 * H), bf), qkv_b=zeros((3 * H,)),
            ao_w=nrm((H, H), bf), ao_b=zeros((H,)),
            ln1_g=ones((H,)), ln1_b=zeros((H,)),
            i_w=nrm((H, I), bf), i_b=zeros((I,)),
            o_w=nrm((I, H), bf), o_b=zeros((H,)),
            ln2_g=ones((H,)), ln2_b=zeros((H,)),
        ))

    bert = dict(
        word_emb=nrm((V, H)),
        bert_pos_emb=nrm((P, H)),
        type_emb=nrm((2, H)),
        emb_ln_g=ones((H,)), emb_ln_b=zeros((H,)),
        layers=layers,
    )

    # Conv weights for all filter widths lane-concatenated: [H, sum(k)*F].
    # Column block (off_k + r)*F..+F corresponds to torch conv_k.weight[:,0,r,:].T
    ksum = sum(cfg["filter_sizes"])
    conv_w = nrm((H, ksum * F), bf)
    conv_b = zeros((len(cfg["filter_sizes"]), F))

    return dict(
        bert=bert,
        position_embedding=nrm((P, H)),
        conv_w=conv_w,
        conv_b=conv_b,
        fc_w=nrm((F * len(cfg["filter_sizes"]), C), bf),
        fc_b=zeros((C,)),
    )


# ----------------------------------------------------------------------------
if __name__ == "__main__":
    cfg = dict(
        vocab=50, hidden=32, heads=4, layers=2, intermediate=64,
        pad_size=16, seq=8, batch=2,
        num_filters=8, filter_sizes=(2, 3, 4), num_classes=3,
    )

    key = jax.random.PRNGKey(0)
    pkey, dkey = jax.random.split(key)
    params = init_params(pkey, cfg)

    B, S = cfg["batch"], cfg["seq"]
    context = jax.random.randint(dkey, (B, S), 0, cfg["vocab"], dtype=jnp.int32)
    seq_len = jnp.full((B,), S, dtype=jnp.int32)                 # x[1] (unused by forward)
    mask = jnp.ones((B, S), jnp.float32).at[1, -2:].set(0.0)     # pad last 2 tokens of sample 1

    logits = model_forward(params, (context, seq_len, mask), cfg)
    jax.block_until_ready(logits)
    assert logits.shape == (B, cfg["num_classes"]), logits.shape
    print("KERNEL_OK")
</pallas_src>

<mosaic_0001>
module attributes {stable_mosaic.version = 11 : i64} {
  func.func @_ln_kernel(%arg0: i32, %arg1: memref<16x32xf32, #tpu.memory_space<vmem>>, %arg2: memref<1x32xf32, #tpu.memory_space<vmem>>, %arg3: memref<1x32xf32, #tpu.memory_space<vmem>>, %arg4: memref<16x32xbf16, #tpu.memory_space<vmem>>) attributes {dimension_semantics = [#tpu.dimension_semantics<parallel>], iteration_bounds = array<i64: 1>, scalar_prefetch = 0 : i64, scratch_operands = 0 : i64, tpu.core_type = #tpu.core_type<tc>, window_params = [{transform_indices = @transform_0, window_bounds = array<i64: 16, 32>}, {pipeline_mode = #tpu.pipeline_mode<synchronous>, transform_indices = @transform_1, window_bounds = array<i64: 1, 32>}, {pipeline_mode = #tpu.pipeline_mode<synchronous>, transform_indices = @transform_2, window_bounds = array<i64: 1, 32>}, {transform_indices = @transform_3, window_bounds = array<i64: 16, 32>}]} {
    %c0 = arith.constant 0 : index
    %c0_0 = arith.constant 0 : index
    %0 = vector.load %arg1[%c0, %c0_0] : memref<16x32xf32, #tpu.memory_space<vmem>>, vector<16x32xf32>
    %cst = arith.constant dense<0.000000e+00> : vector<16xf32>
    %1 = vector.multi_reduction <add>, %0, %cst [1] : vector<16x32xf32> to vector<16xf32>
    %2 = vector.shape_cast %1 : vector<16xf32> to vector<16x1xf32>
    %cst_1 = arith.constant 3.200000e+01 : f32
    %3 = vector.broadcast %cst_1 : f32 to vector<16x1xf32>
    %4 = arith.divf %2, %3 : vector<16x1xf32>
    %5 = vector.broadcast %4 : vector<16x1xf32> to vector<16x32xf32>
    %6 = arith.subf %0, %5 : vector<16x32xf32>
    %7 = arith.mulf %6, %6 : vector<16x32xf32>
    %cst_2 = arith.constant dense<0.000000e+00> : vector<16xf32>
    %8 = vector.multi_reduction <add>, %7, %cst_2 [1] : vector<16x32xf32> to vector<16xf32>
    %9 = vector.shape_cast %8 : vector<16xf32> to vector<16x1xf32>
    %cst_3 = arith.constant 3.200000e+01 : f32
    %10 = vector.broadcast %cst_3 : f32 to vector<16x1xf32>
    %11 = arith.divf %9, %10 : vector<16x1xf32>
    %cst_4 = arith.constant 9.99999996E-13 : f32
    %12 = vector.broadcast %cst_4 : f32 to vector<16x1xf32>
    %13 = arith.addf %11, %12 : vector<16x1xf32>
    %14 = math.rsqrt %13 : vector<16x1xf32>
    %15 = vector.broadcast %14 : vector<16x1xf32> to vector<16x32xf32>
    %16 = arith.mulf %6, %15 : vector<16x32xf32>
    %c0_5 = arith.constant 0 : index
    %c0_6 = arith.constant 0 : index
    %17 = vector.load %arg2[%c0_5, %c0_6] : memref<1x32xf32, #tpu.memory_space<vmem>>, vector<1x32xf32>
    %18 = vector.broadcast %17 : vector<1x32xf32> to vector<16x32xf32>
    %19 = arith.mulf %16, %18 : vector<16x32xf32>
    %c0_7 = arith.constant 0 : index
    %c0_8 = arith.constant 0 : index
    %20 = vector.load %arg3[%c0_7, %c0_8] : memref<1x32xf32, #tpu.memory_space<vmem>>, vector<1x32xf32>
    %21 = vector.broadcast %20 : vector<1x32xf32> to vector<16x32xf32>
    %22 = arith.addf %19, %21 : vector<16x32xf32>
    %23 = arith.truncf %22 : vector<16x32xf32> to vector<16x32xbf16>
    %c0_9 = arith.constant 0 : index
    %c0_10 = arith.constant 0 : index
    %24 = vector.load %arg4[%c0_9, %c0_10] : memref<16x32xbf16, #tpu.memory_space<vmem>>, vector<16x32xbf16>
    tpu.vector_store %arg4[%c0_9, %c0_10], %23 {strides = array<i32>} : memref<16x32xbf16, #tpu.memory_space<vmem>>, vector<16x32xbf16>,
    return
  }
  func.func @transform_0(%arg0: i32) -> (i32, i32) {
    %c0_i32 = arith.constant 0 : i32
    %c0_i32_0 = arith.constant 0 : i32
    return %arg0, %c0_i32 : i32, i32
  }
  func.func @transform_1(%arg0: i32) -> (i32, i32) {
    %c0_i32 = arith.constant 0 : i32
    %c0_i32_0 = arith.constant 0 : i32
    %c0_i32_1 = arith.constant 0 : i32
    return %c0_i32, %c0_i32_0 : i32, i32
  }
  func.func @transform_2(%arg0: i32) -> (i32, i32) {
    %c0_i32 = arith.constant 0 : i32
    %c0_i32_0 = arith.constant 0 : i32
    %c0_i32_1 = arith.constant 0 : i32
    return %c0_i32, %c0_i32_0 : i32, i32
  }
  func.func @transform_3(%arg0: i32) -> (i32, i32) {
    %c0_i32 = arith.constant 0 : i32
    %c0_i32_0 = arith.constant 0 : i32
    return %arg0, %c0_i32 : i32, i32
  }
}

</mosaic_0001>

<bundles_post_ra>
// kernel: tpu_custom_call.1
= control target key start
LH: loop header
LB: loop body
LE: loop exit
PB: predicated region body
PF: predicated region fallthrough
CT: control target
= control target key end

     0   :  { %8 = vsyncpa [#allocation3], 0  ;;  %s229_s0 = inlined_call_operand.hbm [shape: f32[16,32], index: 0, kind: input, shape index: {}]   ;;  %s230_s1 = inlined_call_operand.vmem [shape: f32[1,32], index: 1, kind: input, shape index: {}]   ;;  %s231_s2 = inlined_call_operand.vmem [shape: f32[1,32], index: 2, kind: input, shape index: {}]   ;;  %s232_s3 = inlined_call_operand.hbm [shape: bf16[16,32], index: 3, kind: output, shape index: {}]  }
   0x1   :  { %9 = vsyncpa [#allocation4], 0  ;;  %s169_s12 = smov [#allocation2]   ;;  %s121_s16 = scalar_lea.hbm %s229_s0, 256 }
   0x2   :  { %s15_s13 = sshll.u32 %s169_s12, 4  ;;  %p122_p0 = scmp.ne.s32.totalorder %s229_s0, %s121_s16  ;;  %s16_s13 = int_to_ptr.vmem [resolvable:$true] %s15_s13 }
   0x3   :  { %p125_p1 = scmp.lt.u32.totalorder %s121_s16, %s229_s0 }
   0x5   :  { %p127_p2 = pnand %p125_p1, %p122_p0 }
   0x7   :  { %130 = shalt.err (!%p127_p2)
}
   0x8   :  { %s131_s21 = scalar_lea.vmem %s16_s13, 256  ;;  %p136_p4 = scmp.lt.s32.totalorder %s16_s13, %s16_s13 }
   0x9   :  { %p132_p3 = scmp.ne.s32.totalorder %s16_s13, %s131_s21  ;;  %p137_p5 = scmp.lt.s32.totalorder %s131_s21, %s131_s21 }
   0xb   :  { %p138_p6 = por %p137_p5, %p136_p4 }
   0xd   :  { %p139_p7 = pnand %p138_p6, %p132_p3 }
   0xf   :  { %142 = shalt.err (!%p139_p7)
}
  0x10   :  { %s170_s22 = smov 128   ;;  %s171_s23 = smov 8  }
  0x11   :  { %21 = dma.hbm_to_vmem [thread:$0]  %s229_s0, 256, %s16_s13, [#allocation3], %s170_s22, %s170_s22, %s171_s23  }
  0x12   :  { %165 = dma.done.wait [#allocation3], 256  }
  0x13   :  { %166 = vsyncadd [#allocation3], 4294967040  ;;  %vm31_vm0 = vcmask 261120   ;;  %v29_v0 = vld [vmem:[#allocation2] sm:$0xff]  ;;  %v30_v1 = vld [vmem:[#allocation2 + $0x8] sm:$0xff]  ;;  %vm85_vm1 = vcmask 257024  }
  0x14   :  { %v32_v2 = vsel %vm31_vm0, %v29_v0, 0.0  ;;  %v35_v3 = vsel %vm31_vm0, %v30_v1, 0.0  ;;  %v105_v21 = vld [vmem:[%s230_s1] ss:$0 sm:$0xff]  ;;  %s172_s29 = smov [#allocation5]  }
  0x15   :  { %33 = vadd.xlane.f32.xlu0 %v32_v2  ;;  %v106_v23 = vld [vmem:[%s231_s2] ss:$0 sm:$0xff]  ;;  %s93_s30 = sshll.u32 %s172_s29, 4  ;;  %s94_s30 = int_to_ptr.vmem [resolvable:$true] %s93_s30 }
  0x16   :  { %s143_s1 = scalar_lea.vmem %s94_s30, 128  ;;  %p148_p9 = scmp.lt.s32.totalorder %s94_s30, %s94_s30 }
  0x17   :  { %p144_p8 = scmp.ne.s32.totalorder %s94_s30, %s143_s1  ;;  %p149_p10 = scmp.lt.s32.totalorder %s143_s1, %s143_s1 }
  0x19   :  { %36 = vadd.xlane.f32.xlu0 %v35_v3  ;;  %p150_p11 = por %p149_p10, %p148_p9 }
  0x1b   :  { %p151_p12 = pnand %p150_p11, %p144_p8 }
  0xa2   :  { %v34_v4 = vpop.xlane.xlu0 %33 }
  0xa3   :  { %v39_v5 = vmul.f32 0.03125, %v34_v4 }
  0xa5   :  { %v41_v6 = vsub.f32 %v29_v0, %v39_v5 }
  0xa6   :  { %v37_v7 = vpop.xlane.xlu0 %36 }
  0xa7   :  { %v40_v8 = vmul.f32 0.03125, %v37_v7  ;;  %v43_v9 = vmul.f32 %v41_v6, %v41_v6 }
  0xa9   :  { %v42_v10 = vsub.f32 %v30_v1, %v40_v8  ;;  %v45_v11 = vsel %vm31_vm0, %v43_v9, 0.0 }
  0xaa   :  { %46 = vadd.xlane.f32.xlu1 %v45_v11 }
  0xab   :  { %v44_v12 = vmul.f32 %v42_v10, %v42_v10 }
  0xad   :  { %v48_v13 = vsel %vm31_vm0, %v44_v12, 0.0 }
  0xae   :  { %49 = vadd.xlane.f32.xlu1 %v48_v13 }
 0x137   :  { %v47_v14 = vpop.xlane.xlu1 %46 }
 0x138   :  { %v51_v15 = vmul.f32 0.03125, %v47_v14 }
 0x13a   :  { %v53_v16 = vadd.f32 1e-12, %v51_v15 }
 0x13b   :  { %v50_v17 = vpop.xlane.xlu1 %49 }
 0x13c   :  { %117 = vrsqrt.f32 %v53_v16  ;;  %v52_v18 = vmul.f32 0.03125, %v50_v17 }
 0x13e   :  { %v54_v19 = vadd.f32 1e-12, %v52_v18 }
 0x140   :  { %119 = vrsqrt.f32 %v54_v19 }
 0x146   :  { %v118_v20 = vpop.eup %117 }
 0x147   :  { %v57_v22 = vmul.f32 %v118_v20, %v41_v6 }
 0x149   :  { %v66_v24 = vmul.f32 %v105_v21, %v57_v22 }
 0x14a   :  { %v120_v25 = vpop.eup %119 }
 0x14b   :  { %v58_v26 = vmul.f32 %v120_v25, %v42_v10  ;;  %v75_v27 = vadd.f32 %v106_v23, %v66_v24 }
 0x14d   :  { %v67_v28 = vmul.f32 %v105_v21, %v58_v26  ;;  %v109_v29 = vpack.c.bf16 %v75_v27, %v75_v27 }
 0x14f   :  { %v76_v30 = vadd.f32 %v106_v23, %v67_v28  ;;  %86 = vst.msk [vmem:[#allocation5] sm:$0xf] %vm85_vm1, %v109_v29 }
 0x151   :  { %v110_v31 = vpack.c.bf16 %v76_v30, %v76_v30 }
 0x153   :  { %87 = vst.msk [vmem:[#allocation5 + $0x4] sm:$0xf] %vm85_vm1, %v110_v31 }
 0x154   :  { %154 = shalt.err (!%p151_p12)
}
 0x155   :  { %s155_s5 = scalar_lea.hbm %s232_s3, 128 }
 0x156   :  { %p156_p13 = scmp.ne.s32.totalorder %s232_s3, %s155_s5  ;;  %p159_p0 = scmp.lt.u32.totalorder %s155_s5, %s232_s3 }
 0x158   :  { %p161_p1 = pnand %p159_p0, %p156_p13 }
 0x15a   :  { %164 = shalt.err (!%p161_p1)
}
 0x15b   :  { %s173_s10 = smov 64   ;;  %s174_s11 = smov 4  }
 0x15c   :  { %99 = dma.vmem_to_hbm [thread:$0]  %s94_s30, 128, %s232_s3, [#allocation4], %s173_s10, %s173_s10, %s174_s11  }
 0x15d   :  { %167 = dma.done.wait [#allocation4], 128  }
 0x15e   :  { %168 = vsyncadd [#allocation4], 4294967168 }
 0x15f   :  { %103 = vsyncpa [#allocation3], 1 }
 0x160   :  { %104 = vsyncpa [#allocation4], 1 }

</bundles_post_ra>
